<compile_context>
chip_gen: v7x
topology: tpu7x:2x2x1
jax: 0.10.0
libtpu: 0.0.40
codegen_flags: <defaults>
</compile_context>

<pallas_src>
import functools

import jax
import jax.numpy as jnp
from jax.experimental import pallas as pl
from jax.experimental.pallas import tpu as pltpu

HIDDEN = 64


def _round_up(n, m):
    return ((n + m - 1) // m) * m


def qnet_kernel(x_ref, w0_ref, b0_ref, w1_ref, b1_ref, w2_ref, b2_ref, out_ref):
    # One batch tile per grid step: 3 MXU matmuls with f32 accumulation,
    # bias add + tanh on the VPU/EUP, all in f32.
    x = x_ref[...]                                                     # [tb, state_dim]
    h0 = jnp.tanh(
        jnp.dot(x, w0_ref[...], preferred_element_type=jnp.float32) + b0_ref[...]
    )
    h1 = jnp.tanh(
        jnp.dot(h0, w1_ref[...], preferred_element_type=jnp.float32) + b1_ref[...]
    )
    out = jnp.dot(h1, w2_ref[...], preferred_element_type=jnp.float32) + b2_ref[...]
    out_ref[...] = out.astype(out_ref.dtype)                           # [tb, action_cnt]


@functools.partial(jax.jit, static_argnames=("block_batch",))
def qnet_forward(x, params, *, block_batch=1024):
    """x: [batch, state_dim] float32. params: w0,b0,w1,b1,w2,b2 stored as [in,out]/[1,out]."""
    w0, b0 = params["w0"], params["b0"]
    w1, b1 = params["w1"], params["b1"]
    w2, b2 = params["w2"], params["b2"]

    batch, state_dim = x.shape
    hidden = w0.shape[1]
    action_cnt = w2.shape[1]

    # Batch tile: large enough to amortize per-step overhead, capped so the grid has
    # >=2 steps when possible (lets the "parallel" axis shard across v7x's 2 TCs).
    batch_r = _round_up(batch, 8)
    half = _round_up(pl.cdiv(batch_r, 2), 8)
    tb = max(8, min(block_batch, half))
    batch_p = _round_up(batch, tb)

    # Only pad the batch (rows) if needed; feature dims stay at natural width.
    if batch_p != batch:
        x_in = jnp.zeros((batch_p, state_dim), x.dtype).at[:batch].set(x)
    else:
        x_in = x

    grid = (batch_p // tb,)

    def tiled(shape):      # blocks move with the batch grid index
        return pl.BlockSpec(shape, lambda i: (i, 0))

    def resident(shape):   # same block every step -> stays VMEM-resident (one DMA)
        return pl.BlockSpec(shape, lambda i: (0, 0))

    flops = 2 * batch_p * (state_dim * hidden + hidden * hidden + hidden * action_cnt)
    transcendentals = 2 * batch_p * hidden
    bytes_accessed = 4 * (
        batch_p * state_dim
        + w0.size + w1.size + w2.size + b0.size + b1.size + b2.size
        + batch_p * action_cnt
    )

    out_p = pl.pallas_call(
        qnet_kernel,
        out_shape=jax.ShapeDtypeStruct((batch_p, action_cnt), jnp.float32),
        grid=grid,
        in_specs=[
            tiled((tb, state_dim)),
            resident((state_dim, hidden)), resident((1, hidden)),
            resident((hidden, hidden)), resident((1, hidden)),
            resident((hidden, action_cnt)), resident((1, action_cnt)),
        ],
        out_specs=tiled((tb, action_cnt)),
        compiler_params=pltpu.CompilerParams(
            dimension_semantics=("parallel",),
        ),
        cost_estimate=pl.CostEstimate(
            flops=flops,
            transcendentals=transcendentals,
            bytes_accessed=bytes_accessed,
        ),
    )(x_in, w0, b0, w1, b1, w2, b2)

    # Drop padded batch rows (no lane slicing needed anymore).
    return out_p[:batch] if batch_p != batch else out_p


def init_qnet_params(key, state_dim, action_cnt, hidden=HIDDEN):
    """Deterministic synthetic parameters (PyTorch nn.Linear-style uniform init)."""
    keys = jax.random.split(key, 6)

    def linear(kw, kb, fan_in, fan_out):
        bound = 1.0 / jnp.sqrt(jnp.float32(fan_in))
        # Stored as [in, out] so the kernel does x @ W + b (== PyTorch x @ W.T + b).
        w = jax.random.uniform(kw, (fan_in, fan_out), jnp.float32, -bound, bound)
        b = jax.random.uniform(kb, (1, fan_out), jnp.float32, -bound, bound)
        return w, b

    w0, b0 = linear(keys[0], keys[1], state_dim, hidden)
    w1, b1 = linear(keys[2], keys[3], hidden, hidden)
    w2, b2 = linear(keys[4], keys[5], hidden, action_cnt)
    return {"w0": w0, "b0": b0, "w1": w1, "b1": b1, "w2": w2, "b2": b2}


def qnet_reference(x, params):
    h = jnp.tanh(x @ params["w0"] + params["b0"])
    h = jnp.tanh(h @ params["w1"] + params["b1"])
    return h @ params["w2"] + params["b2"]


if __name__ == "__main__":
    key = jax.random.PRNGKey(0)
    k_params, k_x = jax.random.split(key)

    batch, state_dim, action_cnt = 256, 16, 8
    params = init_qnet_params(k_params, state_dim, action_cnt)
    x = jax.random.normal(k_x, (batch, state_dim), jnp.float32)

    # Default block_batch -> tb=128, grid=(2,): exercises the batch grid + resident
    # weights + both-core sharding on v7x.
    out = qnet_forward(x, params)
    out = jax.block_until_ready(out)

    ref = qnet_reference(x, params)
    assert out.shape == (batch, action_cnt), out.shape
    # MXU default precision on f32 operands; compare at a comfortable tolerance.
    assert jnp.allclose(out, ref, atol=1e-2, rtol=1e-2), "mismatch vs reference"

    print("KERNEL_OK")
</pallas_src>

<mosaic_0001>
module attributes {stable_mosaic.version = 11 : i64} {
  func.func @qnet_kernel(%arg0: i32, %arg1: memref<128x16xf32, #tpu.memory_space<vmem>>, %arg2: memref<16x64xf32, #tpu.memory_space<vmem>>, %arg3: memref<1x64xf32, #tpu.memory_space<vmem>>, %arg4: memref<64x64xf32, #tpu.memory_space<vmem>>, %arg5: memref<1x64xf32, #tpu.memory_space<vmem>>, %arg6: memref<64x8xf32, #tpu.memory_space<vmem>>, %arg7: memref<1x8xf32, #tpu.memory_space<vmem>>, %arg8: memref<128x8xf32, #tpu.memory_space<vmem>>) attributes {dimension_semantics = [#tpu.dimension_semantics<parallel>], iteration_bounds = array<i64: 2>, scalar_prefetch = 0 : i64, scratch_operands = 0 : i64, tpu.core_type = #tpu.core_type<tc>, window_params = [{transform_indices = @transform_0, window_bounds = array<i64: 128, 16>}, {pipeline_mode = #tpu.pipeline_mode<synchronous>, transform_indices = @transform_1, window_bounds = array<i64: 16, 64>}, {pipeline_mode = #tpu.pipeline_mode<synchronous>, transform_indices = @transform_2, window_bounds = array<i64: 1, 64>}, {pipeline_mode = #tpu.pipeline_mode<synchronous>, transform_indices = @transform_3, window_bounds = array<i64: 64, 64>}, {pipeline_mode = #tpu.pipeline_mode<synchronous>, transform_indices = @transform_4, window_bounds = array<i64: 1, 64>}, {pipeline_mode = #tpu.pipeline_mode<synchronous>, transform_indices = @transform_5, window_bounds = array<i64: 64, 8>}, {pipeline_mode = #tpu.pipeline_mode<synchronous>, transform_indices = @transform_6, window_bounds = array<i64: 1, 8>}, {transform_indices = @transform_7, window_bounds = array<i64: 128, 8>}]} {
    %c0 = arith.constant 0 : index
    %c0_0 = arith.constant 0 : index
    %0 = vector.load %arg1[%c0, %c0_0] : memref<128x16xf32, #tpu.memory_space<vmem>>, vector<128x16xf32>
    %c0_1 = arith.constant 0 : index
    %c0_2 = arith.constant 0 : index
    %1 = vector.load %arg2[%c0_1, %c0_2] : memref<16x64xf32, #tpu.memory_space<vmem>>, vector<16x64xf32>
    %cst = arith.constant dense<0.000000e+00> : vector<128x64xf32>
    %2 = tpu.matmul %0, %1, %cst {dimension_numbers = #tpu.dot_dimension_numbers<[1], [0], [0], [1], [0, 0, 1, 1], [], []>} : vector<128x16xf32>, vector<16x64xf32>, vector<128x64xf32> -> vector<128x64xf32>
    %c0_3 = arith.constant 0 : index
    %c0_4 = arith.constant 0 : index
    %3 = vector.load %arg3[%c0_3, %c0_4] : memref<1x64xf32, #tpu.memory_space<vmem>>, vector<1x64xf32>
    %4 = vector.broadcast %3 : vector<1x64xf32> to vector<128x64xf32>
    %5 = arith.addf %2, %4 : vector<128x64xf32>
    %6 = math.tanh %5 : vector<128x64xf32>
    %c0_5 = arith.constant 0 : index
    %c0_6 = arith.constant 0 : index
    %7 = vector.load %arg4[%c0_5, %c0_6] : memref<64x64xf32, #tpu.memory_space<vmem>>, vector<64x64xf32>
    %cst_7 = arith.constant dense<0.000000e+00> : vector<128x64xf32>
    %8 = tpu.matmul %6, %7, %cst_7 {dimension_numbers = #tpu.dot_dimension_numbers<[1], [0], [0], [1], [0, 0, 1, 1], [], []>} : vector<128x64xf32>, vector<64x64xf32>, vector<128x64xf32> -> vector<128x64xf32>
    %c0_8 = arith.constant 0 : index
    %c0_9 = arith.constant 0 : index
    %9 = vector.load %arg5[%c0_8, %c0_9] : memref<1x64xf32, #tpu.memory_space<vmem>>, vector<1x64xf32>
    %10 = vector.broadcast %9 : vector<1x64xf32> to vector<128x64xf32>
    %11 = arith.addf %8, %10 : vector<128x64xf32>
    %12 = math.tanh %11 : vector<128x64xf32>
    %c0_10 = arith.constant 0 : index
    %c0_11 = arith.constant 0 : index
    %13 = vector.load %arg6[%c0_10, %c0_11] : memref<64x8xf32, #tpu.memory_space<vmem>>, vector<64x8xf32>
    %cst_12 = arith.constant dense<0.000000e+00> : vector<128x8xf32>
    %14 = tpu.matmul %12, %13, %cst_12 {dimension_numbers = #tpu.dot_dimension_numbers<[1], [0], [0], [1], [0, 0, 1, 1], [], []>} : vector<128x64xf32>, vector<64x8xf32>, vector<128x8xf32> -> vector<128x8xf32>
    %c0_13 = arith.constant 0 : index
    %c0_14 = arith.constant 0 : index
    %15 = vector.load %arg7[%c0_13, %c0_14] : memref<1x8xf32, #tpu.memory_space<vmem>>, vector<1x8xf32>
    %16 = vector.broadcast %15 : vector<1x8xf32> to vector<128x8xf32>
    %17 = arith.addf %14, %16 : vector<128x8xf32>
    %c0_15 = arith.constant 0 : index
    %c0_16 = arith.constant 0 : index
    %18 = vector.load %arg8[%c0_15, %c0_16] : memref<128x8xf32, #tpu.memory_space<vmem>>, vector<128x8xf32>
    tpu.vector_store %arg8[%c0_15, %c0_16], %17 {strides = array<i32>} : memref<128x8xf32, #tpu.memory_space<vmem>>, vector<128x8xf32>,
    return
  }
  func.func @transform_0(%arg0: i32) -> (i32, i32) {
    %c0_i32 = arith.constant 0 : i32
    %c0_i32_0 = arith.constant 0 : i32
    return %arg0, %c0_i32 : i32, i32
  }
  func.func @transform_1(%arg0: i32) -> (i32, i32) {
    %c0_i32 = arith.constant 0 : i32
    %c0_i32_0 = arith.constant 0 : i32
    %c0_i32_1 = arith.constant 0 : i32
    return %c0_i32, %c0_i32_0 : i32, i32
  }
  func.func @transform_2(%arg0: i32) -> (i32, i32) {
    %c0_i32 = arith.constant 0 : i32
    %c0_i32_0 = arith.constant 0 : i32
    %c0_i32_1 = arith.constant 0 : i32
    return %c0_i32, %c0_i32_0 : i32, i32
  }
  func.func @transform_3(%arg0: i32) -> (i32, i32) {
    %c0_i32 = arith.constant 0 : i32
    %c0_i32_0 = arith.constant 0 : i32
    %c0_i32_1 = arith.constant 0 : i32
    return %c0_i32, %c0_i32_0 : i32, i32
  }
  func.func @transform_4(%arg0: i32) -> (i32, i32) {
    %c0_i32 = arith.constant 0 : i32
    %c0_i32_0 = arith.constant 0 : i32
    %c0_i32_1 = arith.constant 0 : i32
    return %c0_i32, %c0_i32_0 : i32, i32
  }
  func.func @transform_5(%arg0: i32) -> (i32, i32) {
    %c0_i32 = arith.constant 0 : i32
    %c0_i32_0 = arith.constant 0 : i32
    %c0_i32_1 = arith.constant 0 : i32
    return %c0_i32, %c0_i32_0 : i32, i32
  }
  func.func @transform_6(%arg0: i32) -> (i32, i32) {
    %c0_i32 = arith.constant 0 : i32
    %c0_i32_0 = arith.constant 0 : i32
    %c0_i32_1 = arith.constant 0 : i32
    return %c0_i32, %c0_i32_0 : i32, i32
  }
  func.func @transform_7(%arg0: i32) -> (i32, i32) {
    %c0_i32 = arith.constant 0 : i32
    %c0_i32_0 = arith.constant 0 : i32
    return %arg0, %c0_i32 : i32, i32
  }
}

</mosaic_0001>

<bundles_post_ra>
// kernel: qnet_forward.1
= control target key start
LH: loop header
LB: loop body
LE: loop exit
PB: predicated region body
PF: predicated region fallthrough
CT: control target
= control target key end

     0   :  { %s1417_s24 = smov 0   ;;  %s1640_s0 = inlined_call_operand.vmem [shape: f32[256,16], index: 0, kind: input, shape index: {}]   ;;  %s1641_s1 = inlined_call_operand.vmem [shape: f32[16,64], index: 1, kind: input, shape index: {}]   ;;  %s1642_s2 = inlined_call_operand.vmem [shape: f32[1,64], index: 2, kind: input, shape index: {}]   ;;  %s1643_s3 = inlined_call_operand.vmem [shape: f32[64,64], index: 3, kind: input, shape index: {}]   ;;  %s1644_s4 = inlined_call_operand.vmem [shape: f32[1,64], index: 4, kind: input, shape index: {}]   ;;  %s1645_s5 = inlined_call_operand.vmem [shape: f32[64,8], index: 5, kind: input, shape index: {}]   ;;  %s1646_s6 = inlined_call_operand.vmem [shape: f32[1,8], index: 6, kind: input, shape index: {}]   ;;  %s1647_s7 = inlined_call_operand.vmem [shape: f32[256,8], index: 7, kind: output, shape index: {}]  }
   0x1 LB: > { %s1023_s25 = sadd.s32 4294967295, %s1375_s24   ;;  %p1027_p0 = scmp.ge.s32.totalorder %s1375_s24, 1  ;;  %s1375_s24 = sphi %s1417_s24, %s17_s24  }
   0x2   : > { %p238_p1 = scmp.lt.s32.totalorder %s1375_s24, 3 }
   0x4   : > { %p239_p2 = pnand %p1027_p0, %p238_p1 }
   0x5   : > { %v298_v0 = vld [vmem:[%s1641_s1] sm:$0xff] (!%p239_p2)  ;;  %v299_v1 = vld [vmem:[%s1641_s1 + $0x8] sm:$0xff] (!%p239_p2)  ;;  %s1028_s30 = sshll.u32 (!%p239_p2), %s1023_s25, 4  ;;  %vm307_vm0 = vcmask (!%p239_p2), 130048   ;;  %v519_v22 = vld [vmem:[%s1643_s3 + $0x10] sm:$0xff] (!%p239_p2)  ;;  %vm532_vm1 = vcmask (!%p239_p2), 523264  }
   0x6   : > { %242 = sbr.rel (%p239_p2) target bundleno = 716 (0x2cc), region = 48  ;;  %v517_v2 = vld [vmem:[%s1643_s3] sm:$0xff] (!%p239_p2)  ;;  %v1259_v3 = vpack.c.bf16 (!%p239_p2), %v299_v1, %v298_v0  ;;  %p271_p3 = scmp.lt.s32.totalorder (!%p239_p2), %s1028_s30, 31  ;;  %v518_v4 = vld [vmem:[%s1643_s3 + $0x8] sm:$0xff] (!%p239_p2)  ;;  %v520_v23 = vld [vmem:[%s1643_s3 + $0x18] sm:$0xff] (!%p239_p2)  ;;  %vm950_vm2 = vcmask (!%p239_p2), 64512  }
   0x7   : > { %v1263_v5 = vpack.c.bf16 (!%p239_p2), %v518_v4, %v517_v2  ;;  %v1267_v24 = vpack.c.bf16 (!%p239_p2), %v520_v23, %v519_v22  ;;  %v521_v25 = vld [vmem:[%s1643_s3 + $0x20] sm:$0xff] (!%p239_p2)  ;;  %v522_v26 = vld [vmem:[%s1643_s3 + $0x28] sm:$0xff] (!%p239_p2)  ;;  %v523_v28 = vld [vmem:[%s1643_s3 + $0x30] sm:$0xff] (!%p239_p2) }
   0x8   : > { %1260 = vmatprep.subr.bf16.mxu0 (!%p239_p2), %v1259_v3  ;;  %1295 = vmatprep.subr.bf16.mxu1 (!%p239_p2), %v1259_v3  ;;  %v1271_v27 = vpack.c.bf16 (!%p239_p2), %v522_v26, %v521_v25  ;;  %v524_v29 = vld [vmem:[%s1643_s3 + $0x38] sm:$0xff] (!%p239_p2)  ;;  %v742_v31 = vld [vmem:[%s1645_s5] sm:$0xff] (!%p239_p2)  ;;  %v743_v32 = vld [vmem:[%s1645_s5 + $0x8] sm:$0xff] (!%p239_p2) }
   0x9   : > { %1262 = vmatpush3.bf16.msra.mxu0 (!%p239_p2), %v1259_v3  ;;  %1296 = vmatpush3.bf16.msra.mxu1 (!%p239_p2), %v1259_v3  ;;  %v1275_v30 = vpack.c.bf16 (!%p239_p2), %v524_v29, %v523_v28  ;;  %v1279_v33 = vpack.c.bf16 (!%p239_p2), %v743_v32, %v742_v31  ;;  %v1506_v34 = vld [vmem:[%s1642_s2] ss:$0 sm:$0xff] (!%p239_p2)  ;;  %v747_v23 = vld [vmem:[%s1645_s5 + $0x28] sm:$0xff] (!%p239_p2)  ;;  %v748_v25 = vld [vmem:[%s1645_s5 + $0x30] sm:$0xff] (!%p239_p2) }
   0xa   : > { %1264 = vmatprep.subr.bf16.mxu1 (!%p239_p2), %v1263_v5  ;;  %v746_v22 = vld [vmem:[%s1645_s5 + $0x20] sm:$0xff] (!%p239_p2)  ;;  %v749_v26 = vld [vmem:[%s1645_s5 + $0x38] sm:$0xff] (!%p239_p2) }
   0xb   : > { %1280 = vmatprep.subr.bf16.mxu0 (!%p239_p2), %v1279_v33  ;;  %v1561_v28 = vld [vmem:[%s1644_s4] ss:$0 sm:$0xff] (!%p239_p2) }
   0xd   : > { %s1649_s30 = smov (!%p271_p3, %s1028_s30), 31 }
   0xe   : > { %s1029_s12 = sshll.u32 %s1649_s30, 3 }
   0xf   : > { %s1445_s15 = scalar_lea.vmem %s1640_s0, %s1029_s12  ;;  %s1603_s11 = scalar_lea.vmem %s1647_s7, %s1029_s12 }
  0x10   : > { %v282_v6 = vld [vmem:[%s1445_s15] sm:$0xff]  ;;  %v283_v7 = vld [vmem:[%s1445_s15 + $0x8] sm:$0xff]  ;;  %v284_v8 = vld [vmem:[%s1445_s15 + $0x10] sm:$0xff] }
  0x11   : > { %1155 = vmatprep.mubr.msk.f32.mxu0 %vm307_vm0, %v282_v6  ;;  %v290_v9 = vld [vmem:[%s1445_s15 + $0x40] sm:$0xff]  ;;  %v285_v10 = vld [vmem:[%s1445_s15 + $0x18] sm:$0xff]  ;;  %v291_v11 = vld [vmem:[%s1445_s15 + $0x48] sm:$0xff] }
  0x12   : > { %1156 = vmatmul.mubr.msk.f32.vlgmr.msra.gmra.mrb[0].mxu0 %vm307_vm0, %v283_v7  ;;  %1167 = vmatprep.mubr.msk.f32.mxu1 %vm307_vm0, %v290_v9  ;;  %v292_v12 = vld [vmem:[%s1445_s15 + $0x50] sm:$0xff]  ;;  %v286_v13 = vld [vmem:[%s1445_s15 + $0x20] sm:$0xff]  ;;  %v293_v14 = vld [vmem:[%s1445_s15 + $0x58] sm:$0xff] }
  0x13   : > { %1158 = vmatprep.mubr.msk.f32.mxu0 %vm307_vm0, %v284_v8  ;;  %1168 = vmatmul.mubr.msk.f32.vlgmr.msra.gmra.mrb[0].mxu1 %vm307_vm0, %v291_v11  ;;  %v294_v15 = vld [vmem:[%s1445_s15 + $0x60] sm:$0xff]  ;;  %v287_v16 = vld [vmem:[%s1445_s15 + $0x28] sm:$0xff]  ;;  %v288_v17 = vld [vmem:[%s1445_s15 + $0x30] sm:$0xff] }
  0x14   : > { %1170 = vmatprep.mubr.msk.f32.mxu1 %vm307_vm0, %v292_v12  ;;  %1266 = vmatpush3.bf16.msra.mxu1 %v1263_v5  ;;  %v295_v18 = vld [vmem:[%s1445_s15 + $0x68] sm:$0xff]  ;;  %v296_v19 = vld [vmem:[%s1445_s15 + $0x70] sm:$0xff]  ;;  %v289_v20 = vld [vmem:[%s1445_s15 + $0x38] sm:$0xff] }
  0x15   : > { %v297_v21 = vld [vmem:[%s1445_s15 + $0x78] sm:$0xff]  ;;  %1268 = vmatprep.subr.bf16.mxu1 %v1267_v24  ;;  %1282 = vmatpush3.bf16.msra.mxu0 %v1279_v33 }
  0x16   : > { %1159 = vmatmul.mubr.msk.f32.gmra.mrb[2].mxu0 %vm307_vm0, %v285_v10 }
  0x17   : > { %1161 = vmatprep.mubr.msk.f32.mxu0 %vm307_vm0, %v286_v13  ;;  %1171 = vmatmul.mubr.msk.f32.gmra.mrb[2].mxu1 %vm307_vm0, %v293_v14 }
  0x18   : > { %1173 = vmatprep.mubr.msk.f32.mxu1 %vm307_vm0, %v294_v15  ;;  %1270 = vmatpush3.bf16.msra.mxu1 %v1267_v24  ;;  %v1287_v24 = vpack.c.bf16 %v747_v23, %v746_v22 }
  0x19   : > { %1272 = vmatprep.subr.bf16.mxu1 %v1271_v27 }
  0x1a   : > { %1162 = vmatmul.mubr.msk.f32.gmra.mrb[4].mxu0 %vm307_vm0, %v287_v16 }
  0x1b   : > { %1164 = vmatprep.mubr.msk.f32.mxu0 %vm307_vm0, %v288_v17  ;;  %1174 = vmatmul.mubr.msk.f32.gmra.mrb[4].mxu1 %vm307_vm0, %v295_v18 }
  0x1c   : > { %1176 = vmatprep.mubr.msk.f32.mxu1 %vm307_vm0, %v296_v19  ;;  %1274 = vmatpush3.bf16.msra.mxu1 %v1271_v27  ;;  %v744_v19 = vld [vmem:[%s1645_s5 + $0x10] sm:$0xff]  ;;  %v1291_v27 = vpack.c.bf16 %v749_v26, %v748_v25 }
  0x1d   : > { %1276 = vmatprep.subr.bf16.mxu1 %v1275_v30 }
  0x1e   : > { %1165 = vmatmul.mubr.msk.f32.gmra.mrb[6].mxu0 %vm307_vm0, %v289_v20  ;;  %v745_v20 = vld [vmem:[%s1645_s5 + $0x18] sm:$0xff] }
  0x1f   : > { %1177 = vmatmul.mubr.msk.f32.gmra.mrb[6].mxu1 %vm307_vm0, %v297_v21  ;;  %v1283_v21 = vpack.c.bf16 %v745_v20, %v744_v19 }
  0x20   : > { %1278 = vmatpush3.bf16.msra.mxu1 %v1275_v30 }
  0x21   : > { %1284 = vmatprep.subr.bf16.mxu0 %v1283_v21 }
  0x22   : > { %1286 = vmatpush3.bf16.msra.mxu0 %v1283_v21 }
  0x23   : > { %1288 = vmatprep.subr.bf16.mxu0 %v1287_v24 }
  0x26   : > { %1290 = vmatpush3.bf16.msra.mxu0 %v1287_v24 }
  0x27   : > { %1292 = vmatprep.subr.bf16.mxu0 %v1291_v27 }
  0x2a   : > { %1294 = vmatpush3.bf16.msra.mxu0 %v1291_v27 }
  0xe5   : > { %v1157_v35 = vpop.f32.mrb[0].mxu0 }
  0xe6   : > { %v428_v36 = vadd.f32 %v1157_v35, %v1506_v34  ;;  %v422_v37 = vpop.f32.mrb[1].mxu0  ;;  %v1169_v39 = vpop.f32.mrb[0].mxu1 }
  0xe7   : > { %v423_v38 = vadd.f32 %v1506_v34, %v422_v37  ;;  %v462_v40 = vpop.f32.mrb[1].mxu1  ;;  %v468_v63 = vadd.f32 %v1169_v39, %v1506_v34 }
  0xe8   : > { %v463_v52 = vadd.f32 %v1506_v34, %v462_v40 }
  0xe9   : > { %1305 = vtanh.f32 %v423_v38  ;;  %v1160_v41 = vpop.f32.mrb[2].mxu0 }
  0xea   : > { %1307 = vtanh.f32 %v428_v36  ;;  %v438_v42 = vadd.f32 %v1160_v41, %v1506_v34  ;;  %v432_v43 = vpop.f32.mrb[3].mxu0  ;;  %v1172_v45 = vpop.f32.mrb[2].mxu1 }
  0xeb   : > { %v433_v44 = vadd.f32 %v1506_v34, %v432_v43  ;;  %v472_v46 = vpop.f32.mrb[3].mxu1  ;;  %v478_v3 = vadd.f32 %v1172_v45, %v1506_v34 }
  0xec   : > { %v473_v62 = vadd.f32 %v1506_v34, %v472_v46 }
  0xed   : > { %1309 = vtanh.f32 %v433_v44  ;;  %v1163_v47 = vpop.f32.mrb[4].mxu0 }
  0xee   : > { %1311 = vtanh.f32 %v438_v42  ;;  %v448_v48 = vadd.f32 %v1163_v47, %v1506_v34  ;;  %v442_v49 = vpop.f32.mrb[5].mxu0  ;;  %v1175_v51 = vpop.f32.mrb[4].mxu1 }
  0xef   : > { %v443_v50 = vadd.f32 %v1506_v34, %v442_v49  ;;  %v482_v53 = vpop.f32.mrb[5].mxu1  ;;  %v488_v8 = vadd.f32 %v1175_v51, %v1506_v34 }
  0xf0   : > { %v483_v2 = vadd.f32 %v1506_v34, %v482_v53 }
  0xf1   : > { %1313 = vtanh.f32 %v443_v50  ;;  %v1166_v54 = vpop.f32.mrb[6].mxu0 }
  0xf2   : > { %1315 = vtanh.f32 %v448_v48  ;;  %v458_v55 = vadd.f32 %v1166_v54, %v1506_v34  ;;  %v452_v56 = vpop.f32.mrb[7].mxu0  ;;  %v1178_v59 = vpop.f32.mrb[6].mxu1 }
  0xf3   : > { %v1306_v57 = vpop.eup %1305  ;;  %v453_v58 = vadd.f32 %v1506_v34, %v452_v56  ;;  %1317 = vtanh.f32 %v463_v52  ;;  %v492_v61 = vpop.f32.mrb[7].mxu1  ;;  %v498_v11 = vadd.f32 %v1178_v59, %v1506_v34 }
  0xf4   : > { %v1308_v60 = vpop.eup %1307  ;;  %1195 = vmatprep.mubr.msk.f32.mxu1 %vm532_vm1, %v1306_v57  ;;  %v493_v6 = vadd.f32 %v1506_v34, %v492_v61 }
  0xf5   : > { %1319 = vtanh.f32 %v453_v58  ;;  %1196 = vmatmul.mubr.msk.f32.vlgmr.msra.gmra.mrb[8].mxu1 %vm532_vm1, %v1308_v60 }
  0xf6   : > { %1321 = vtanh.f32 %v458_v55 }
  0xf7   : > { %v1310_v0 = vpop.eup %1309  ;;  %1323 = vtanh.f32 %v473_v62 }
  0xf8   : > { %v1312_v1 = vpop.eup %1311  ;;  %1198 = vmatprep.mubr.msk.f32.mxu1 %vm532_vm1, %v1310_v0  ;;  %1325 = vtanh.f32 %v468_v63 }
  0xf9   : > { %1199 = vmatmul.mubr.msk.f32.gmra.mrb[10].mxu1 %vm532_vm1, %v1312_v1  ;;  %1327 = vtanh.f32 %v483_v2 }
  0xfa   : > { %1329 = vtanh.f32 %v478_v3 }
  0xfb   : > { %v1314_v4 = vpop.eup %1313  ;;  %1331 = vtanh.f32 %v493_v6 }
  0xfc   : > { %v1316_v5 = vpop.eup %1315  ;;  %1201 = vmatprep.mubr.msk.f32.mxu1 %vm532_vm1, %v1314_v4  ;;  %1333 = vtanh.f32 %v488_v8 }
  0xfd   : > { %1202 = vmatmul.mubr.msk.f32.gmra.mrb[12].mxu1 %vm532_vm1, %v1316_v5  ;;  %v1318_v7 = vpop.eup %1317  ;;  %1335 = vtanh.f32 %v498_v11 }
  0xff   : > { %v1320_v9 = vpop.eup %1319 }
 0x100   : > { %v1322_v10 = vpop.eup %1321  ;;  %1204 = vmatprep.mubr.msk.f32.mxu1 %vm532_vm1, %v1320_v9 }
 0x101   : > { %1205 = vmatmul.mubr.msk.f32.gmra.mrb[14].mxu1 %vm532_vm1, %v1322_v10  ;;  %v1324_v12 = vpop.eup %1323 }
 0x102   : > { %1207 = vmatprep.mubr.msk.f32.mxu1 %vm532_vm1, %v1318_v7  ;;  %v1326_v13 = vpop.eup %1325 }
 0x103   : > { %v1328_v14 = vpop.eup %1327 }
 0x104   : > { %v1330_v15 = vpop.eup %1329 }
 0x105   : > { %1208 = vmatmul.mubr.msk.f32.gmra.mrb[16].mxu1 %vm532_vm1, %v1326_v13  ;;  %v1332_v16 = vpop.eup %1331  ;;  %v1066_v13 = vld [vmem:[%s1646_s6] ss:$0 sm:$0xff] }
 0x106   : > { %1210 = vmatprep.mubr.msk.f32.mxu1 %vm532_vm1, %v1324_v12  ;;  %v1334_v17 = vpop.eup %1333 }
 0x107   : > { %v1336_v18 = vpop.eup %1335 }
 0x109   : > { %1211 = vmatmul.mubr.msk.f32.gmra.mrb[18].mxu1 %vm532_vm1, %v1330_v15 }
 0x10a   : > { %1213 = vmatprep.mubr.msk.f32.mxu1 %vm532_vm1, %v1328_v14 }
 0x10d   : > { %1214 = vmatmul.mubr.msk.f32.gmra.mrb[20].mxu1 %vm532_vm1, %v1334_v17 }
 0x10e   : > { %1216 = vmatprep.mubr.msk.f32.mxu1 %vm532_vm1, %v1332_v16 }
 0x111   : > { %1217 = vmatmul.mubr.msk.f32.gmra.mrb[22].mxu1 %vm532_vm1, %v1336_v18 }
 0x1c8   : > { %v1197_v29 = vpop.f32.mrb[8].mxu1 }
 0x1c9   : > { %v653_v30 = vadd.f32 %v1197_v29, %v1561_v28  ;;  %v647_v31 = vpop.f32.mrb[9].mxu1 }
 0x1ca   : > { %v648_v32 = vadd.f32 %v1561_v28, %v647_v31 }
 0x1cc   : > { %1337 = vtanh.f32 %v648_v32  ;;  %v1200_v33 = vpop.f32.mrb[10].mxu1 }
 0x1cd   : > { %1339 = vtanh.f32 %v653_v30  ;;  %v663_v34 = vadd.f32 %v1200_v33, %v1561_v28  ;;  %v657_v35 = vpop.f32.mrb[11].mxu1 }
 0x1ce   : > { %v658_v36 = vadd.f32 %v1561_v28, %v657_v35 }
 0x1d0   : > { %1341 = vtanh.f32 %v658_v36  ;;  %v1203_v37 = vpop.f32.mrb[12].mxu1 }
 0x1d1   : > { %1343 = vtanh.f32 %v663_v34  ;;  %v673_v38 = vadd.f32 %v1203_v37, %v1561_v28  ;;  %v667_v39 = vpop.f32.mrb[13].mxu1 }
 0x1d2   : > { %v668_v40 = vadd.f32 %v1561_v28, %v667_v39 }
 0x1d4   : > { %1345 = vtanh.f32 %v668_v40  ;;  %v1206_v41 = vpop.f32.mrb[14].mxu1 }
 0x1d5   : > { %1347 = vtanh.f32 %v673_v38  ;;  %v683_v42 = vadd.f32 %v1206_v41, %v1561_v28  ;;  %v677_v43 = vpop.f32.mrb[15].mxu1 }
 0x1d6   : > { %v1338_v44 = vpop.eup %1337  ;;  %v678_v45 = vadd.f32 %v1561_v28, %v677_v43 }
 0x1d7   : > { %v1340_v46 = vpop.eup %1339  ;;  %1235 = vmatprep.mubr.msk.f32.mxu0 %vm532_vm1, %v1338_v44 }
 0x1d8   : > { %1349 = vtanh.f32 %v678_v45  ;;  %v1209_v47 = vpop.f32.mrb[16].mxu1  ;;  %1236 = vmatmul.mubr.msk.f32.vlgmr.msra.gmra.mrb[8].mxu0 %vm532_vm1, %v1340_v46 }
 0x1d9   : > { %1351 = vtanh.f32 %v683_v42  ;;  %v693_v48 = vadd.f32 %v1209_v47, %v1561_v28  ;;  %v687_v49 = vpop.f32.mrb[17].mxu1 }
 0x1da   : > { %v1342_v50 = vpop.eup %1341  ;;  %v688_v51 = vadd.f32 %v1561_v28, %v687_v49 }
 0x1db   : > { %v1344_v52 = vpop.eup %1343  ;;  %1238 = vmatprep.mubr.msk.f32.mxu0 %vm532_vm1, %v1342_v50 }
 0x1dc   : > { %1353 = vtanh.f32 %v688_v51  ;;  %v1212_v53 = vpop.f32.mrb[18].mxu1  ;;  %1239 = vmatmul.mubr.msk.f32.gmra.mrb[10].mxu0 %vm532_vm1, %v1344_v52 }
 0x1dd   : > { %1355 = vtanh.f32 %v693_v48  ;;  %v703_v54 = vadd.f32 %v1212_v53, %v1561_v28  ;;  %v697_v55 = vpop.f32.mrb[19].mxu1 }
 0x1de   : > { %v1346_v56 = vpop.eup %1345  ;;  %v698_v57 = vadd.f32 %v1561_v28, %v697_v55 }
 0x1df   : > { %v1348_v58 = vpop.eup %1347  ;;  %1241 = vmatprep.mubr.msk.f32.mxu0 %vm532_vm1, %v1346_v56 }
 0x1e0   : > { %1357 = vtanh.f32 %v698_v57  ;;  %v1215_v59 = vpop.f32.mrb[20].mxu1  ;;  %1242 = vmatmul.mubr.msk.f32.gmra.mrb[12].mxu0 %vm532_vm1, %v1348_v58 }
 0x1e1   : > { %1359 = vtanh.f32 %v703_v54  ;;  %v713_v60 = vadd.f32 %v1215_v59, %v1561_v28  ;;  %v707_v61 = vpop.f32.mrb[21].mxu1 }
 0x1e2   : > { %v1350_v62 = vpop.eup %1349  ;;  %v708_v63 = vadd.f32 %v1561_v28, %v707_v61 }
 0x1e3   : > { %v1352_v0 = vpop.eup %1351  ;;  %1244 = vmatprep.mubr.msk.f32.mxu0 %vm532_vm1, %v1350_v62 }
 0x1e4   : > { %1361 = vtanh.f32 %v708_v63  ;;  %v1218_v1 = vpop.f32.mrb[22].mxu1  ;;  %1245 = vmatmul.mubr.msk.f32.gmra.mrb[14].mxu0 %vm532_vm1, %v1352_v0 }
 0x1e5   : > { %1363 = vtanh.f32 %v713_v60  ;;  %v723_v2 = vadd.f32 %v1218_v1, %v1561_v28  ;;  %v717_v3 = vpop.f32.mrb[23].mxu1 }
 0x1e6   : > { %v1354_v4 = vpop.eup %1353  ;;  %v718_v5 = vadd.f32 %v1561_v28, %v717_v3 }
 0x1e7   : > { %v1356_v6 = vpop.eup %1355  ;;  %1247 = vmatprep.mubr.msk.f32.mxu0 %vm532_vm1, %v1354_v4 }
 0x1e8   : > { %1365 = vtanh.f32 %v718_v5  ;;  %1248 = vmatmul.mubr.msk.f32.gmra.mrb[16].mxu0 %vm532_vm1, %v1356_v6 }
 0x1e9   : > { %1367 = vtanh.f32 %v723_v2 }
 0x1ea   : > { %v1358_v7 = vpop.eup %1357 }
 0x1eb   : > { %v1360_v8 = vpop.eup %1359  ;;  %1250 = vmatprep.mubr.msk.f32.mxu0 %vm532_vm1, %v1358_v7 }
 0x1ec   : > { %1251 = vmatmul.mubr.msk.f32.gmra.mrb[18].mxu0 %vm532_vm1, %v1360_v8 }
 0x1ee   : > { %v1362_v9 = vpop.eup %1361 }
 0x1ef   : > { %v1364_v10 = vpop.eup %1363  ;;  %1253 = vmatprep.mubr.msk.f32.mxu0 %vm532_vm1, %v1362_v9 }
 0x1f0   : > { %1254 = vmatmul.mubr.msk.f32.gmra.mrb[20].mxu0 %vm532_vm1, %v1364_v10 }
 0x1f2   : > { %v1366_v11 = vpop.eup %1365 }
 0x1f3   : > { %v1368_v12 = vpop.eup %1367  ;;  %1256 = vmatprep.mubr.msk.f32.mxu0 %vm532_vm1, %v1366_v11 }
 0x1f4   : > { %1257 = vmatmul.mubr.msk.f32.gmra.mrb[22].mxu0 %vm532_vm1, %v1368_v12 }
 0x2ab   : > { %v1237_v14 = vpop.f32.mrb[8].mxu0 }
 0x2ac   : > { %v877_v15 = vadd.f32 %v1237_v14, %v1066_v13  ;;  %v871_v16 = vpop.f32.mrb[9].mxu0 }
 0x2ad   : > { %v872_v17 = vadd.f32 %v1066_v13, %v871_v16 }
 0x2ae   : > { %952 = vst.msk [vmem:[%s1603_s11 + $0x8] sm:$0xff] %vm950_vm2, %v877_v15 }
 0x2af   : > { %951 = vst.msk [vmem:[%s1603_s11] sm:$0xff] %vm950_vm2, %v872_v17  ;;  %v1240_v18 = vpop.f32.mrb[10].mxu0 }
 0x2b0   : > { %v887_v19 = vadd.f32 %v1240_v18, %v1066_v13  ;;  %v881_v20 = vpop.f32.mrb[11].mxu0 }
 0x2b1   : > { %v882_v21 = vadd.f32 %v1066_v13, %v881_v20 }
 0x2b2   : > { %954 = vst.msk [vmem:[%s1603_s11 + $0x18] sm:$0xff] %vm950_vm2, %v887_v19 }
 0x2b3   : > { %953 = vst.msk [vmem:[%s1603_s11 + $0x10] sm:$0xff] %vm950_vm2, %v882_v21  ;;  %v1243_v22 = vpop.f32.mrb[12].mxu0 }
 0x2b4   : > { %v897_v23 = vadd.f32 %v1243_v22, %v1066_v13  ;;  %v891_v24 = vpop.f32.mrb[13].mxu0 }
 0x2b5   : > { %v892_v25 = vadd.f32 %v1066_v13, %v891_v24 }
 0x2b6   : > { %956 = vst.msk [vmem:[%s1603_s11 + $0x28] sm:$0xff] %vm950_vm2, %v897_v23 }
 0x2b7   : > { %955 = vst.msk [vmem:[%s1603_s11 + $0x20] sm:$0xff] %vm950_vm2, %v892_v25  ;;  %v1246_v26 = vpop.f32.mrb[14].mxu0 }
 0x2b8   : > { %v907_v27 = vadd.f32 %v1246_v26, %v1066_v13  ;;  %v901_v28 = vpop.f32.mrb[15].mxu0 }
 0x2b9   : > { %v902_v29 = vadd.f32 %v1066_v13, %v901_v28 }
 0x2ba   : > { %958 = vst.msk [vmem:[%s1603_s11 + $0x38] sm:$0xff] %vm950_vm2, %v907_v27 }
 0x2bb   : > { %957 = vst.msk [vmem:[%s1603_s11 + $0x30] sm:$0xff] %vm950_vm2, %v902_v29  ;;  %v1249_v30 = vpop.f32.mrb[16].mxu0 }
 0x2bc   : > { %v917_v31 = vadd.f32 %v1249_v30, %v1066_v13  ;;  %v911_v32 = vpop.f32.mrb[17].mxu0 }
 0x2bd   : > { %v912_v33 = vadd.f32 %v1066_v13, %v911_v32 }
 0x2be   : > { %960 = vst.msk [vmem:[%s1603_s11 + $0x48] sm:$0xff] %vm950_vm2, %v917_v31 }
 0x2bf   : > { %959 = vst.msk [vmem:[%s1603_s11 + $0x40] sm:$0xff] %vm950_vm2, %v912_v33  ;;  %v1252_v34 = vpop.f32.mrb[18].mxu0 }
 0x2c0   : > { %v927_v35 = vadd.f32 %v1252_v34, %v1066_v13  ;;  %v921_v36 = vpop.f32.mrb[19].mxu0 }
 0x2c1   : > { %v922_v37 = vadd.f32 %v1066_v13, %v921_v36 }
 0x2c2   : > { %962 = vst.msk [vmem:[%s1603_s11 + $0x58] sm:$0xff] %vm950_vm2, %v927_v35 }
 0x2c3   : > { %961 = vst.msk [vmem:[%s1603_s11 + $0x50] sm:$0xff] %vm950_vm2, %v922_v37  ;;  %v1255_v38 = vpop.f32.mrb[20].mxu0 }
 0x2c4   : > { %v937_v39 = vadd.f32 %v1255_v38, %v1066_v13  ;;  %v931_v40 = vpop.f32.mrb[21].mxu0 }
 0x2c5   : > { %v932_v41 = vadd.f32 %v1066_v13, %v931_v40 }
 0x2c6   : > { %964 = vst.msk [vmem:[%s1603_s11 + $0x68] sm:$0xff] %vm950_vm2, %v937_v39 }
 0x2c7   : > { %963 = vst.msk [vmem:[%s1603_s11 + $0x60] sm:$0xff] %vm950_vm2, %v932_v41  ;;  %v1258_v42 = vpop.f32.mrb[22].mxu0 }
 0x2c8   : > { %v947_v43 = vadd.f32 %v1258_v42, %v1066_v13  ;;  %v941_v44 = vpop.f32.mrb[23].mxu0 }
 0x2c9   : > { %v942_v45 = vadd.f32 %v1066_v13, %v941_v44 }
 0x2ca   : > { %966 = vst.msk [vmem:[%s1603_s11 + $0x78] sm:$0xff] %vm950_vm2, %v947_v43 }
 0x2cb   : > { %965 = vst.msk [vmem:[%s1603_s11 + $0x70] sm:$0xff] %vm950_vm2, %v942_v45 }
 0x2cc PF: > { %s17_s24 = sadd.s32 1, %s1375_s24  }
 0x2cd   : > { %p14_p4 = scmp.ge.s32.totalorder %s17_s24, 4  }
 0x2cf   :  { %16 = sbr.rel (!%p14_p4) target bundleno = 1 (0x1), region = 78 }

</bundles_post_ra>
